<compile_context>
chip_gen: v6e
topology: v6e:2x2x1
jax: 0.10.0
libtpu: 0.0.40
codegen_flags: <defaults>
</compile_context>

<pallas_src>
import functools

import jax
import jax.numpy as jnp
from jax.experimental import pallas as pl
from jax.experimental.pallas import tpu as pltpu

_SUBLANES = 8


def _round_up(x, m):
    return ((x + m - 1) // m) * m


def _num_tensorcores():
    """Best-effort count of TensorCores per device (2 on v7x, else 1)."""
    try:
        dev = jax.devices()[0]
        n = getattr(dev, "num_cores", None)
        if isinstance(n, int) and n >= 1:
            return n
        kind = str(getattr(dev, "device_kind", "")).lower()
        if "v7" in kind:
            return 2
    except Exception:
        pass
    return 1


def _make_mlp_kernel(n_layers):
    """Builds an n-layer MLP kernel; refs = (x, w1, b1, ..., wN, bN, out)."""

    def kernel(*refs):
        x_ref, o_ref = refs[0], refs[-1]
        wb = refs[1:-1]
        h = x_ref[...]
        for layer in range(n_layers):
            w = wb[2 * layer][...]
            b = wb[2 * layer + 1][...]
            acc = jnp.dot(h, w, preferred_element_type=jnp.float32) + b
            h = jnp.maximum(acc, 0.0) if layer + 1 < n_layers else acc
        o_ref[...] = h.astype(o_ref.dtype)

    return kernel


def dqn_forward(observation, params, *, block_rows=4096):
    """observation: [B, obs_dim]; params: dict of w1,b1,...,wN,bN ([in,out])."""
    n_layers = sum(1 for k in params if k.startswith("w"))
    weights = [params[f"w{i}"].astype(jnp.float32)
               for i in range(1, n_layers + 1)]
    biases = [params[f"b{i}"].astype(jnp.float32)
              for i in range(1, n_layers + 1)]

    batch, obs_dim = observation.shape
    act_dim = weights[-1].shape[1]

    # Batch tiling: tm rows per grid step, always a multiple of the 8-row
    # sublane pack; pad the batch up to a multiple of tm (sliced off below).
    block_rows = max(_SUBLANES, _round_up(block_rows, _SUBLANES))
    batch8 = _round_up(batch, _SUBLANES)
    tm = min(block_rows, batch8)
    num_tc = _num_tensorcores()
    if num_tc > 1:
        # v7x: make sure the "parallel" axis has >= num_tc grid steps.
        tm = max(_SUBLANES,
                 min(tm, _round_up(pl.cdiv(batch8, num_tc), _SUBLANES)))
    batch_pad = pl.cdiv(batch, tm) * tm

    x = observation.astype(jnp.float32)
    if batch_pad != batch:
        x = jnp.pad(x, ((0, batch_pad - batch), (0, 0)))

    wb_args, wb_specs = [], []
    for w, b in zip(weights, biases):
        wb_args += [w, b]
        # Constant index_map -> DMA'd once, VMEM-resident across grid steps.
        wb_specs += [pl.BlockSpec(w.shape, lambda i: (0, 0)),
                     pl.BlockSpec(b.shape, lambda i: (0, 0))]

    out = pl.pallas_call(
        _make_mlp_kernel(n_layers),
        out_shape=jax.ShapeDtypeStruct((batch_pad, act_dim), jnp.float32),
        grid=(batch_pad // tm,),
        in_specs=[pl.BlockSpec((tm, obs_dim), lambda i: (i, 0))] + wb_specs,
        out_specs=pl.BlockSpec((tm, act_dim), lambda i: (i, 0)),
        compiler_params=pltpu.CompilerParams(
            dimension_semantics=("parallel",)),
    )(x, *wb_args)

    return out[:batch]


def init_dqn_params(key, obs_dim, act_dim, hidden_layers):
    """Deterministic init mirroring nn.Linear shapes (stored as [in, out])."""
    layer_dims = [obs_dim] + list(hidden_layers) + [act_dim]
    params = {}
    for i, (din, dout) in enumerate(zip(layer_dims[:-1], layer_dims[1:]), 1):
        key, kw, kb = jax.random.split(key, 3)
        bound = 1.0 / jnp.sqrt(jnp.float32(din))  # PyTorch default uniform bound
        params[f"w{i}"] = jax.random.uniform(
            kw, (din, dout), jnp.float32, minval=-bound, maxval=bound)
        params[f"b{i}"] = jax.random.uniform(
            kb, (1, dout), jnp.float32, minval=-bound, maxval=bound)
    return params


def _reference_mlp(x, params):
    """Pure-JAX f32 MLP reference."""
    n_layers = sum(1 for k in params if k.startswith("w"))
    h = x.astype(jnp.float32)
    for i in range(1, n_layers + 1):
        w = params[f"w{i}"].astype(jnp.float32)
        b = params[f"b{i}"].astype(jnp.float32)
        acc = jnp.dot(h, w, preferred_element_type=jnp.float32) + b
        h = jnp.maximum(acc, 0.0) if i < n_layers else acc
    return h


if __name__ == "__main__":
    obs_dim, hidden_layers, act_dim = 16, [32, 32], 8

    key = jax.random.PRNGKey(0)
    key, kx = jax.random.split(key)
    params = init_dqn_params(key, obs_dim, act_dim, hidden_layers)

    fwd = jax.jit(functools.partial(dqn_forward, block_rows=4096))

    # Small batch: tile padded to 8 rows, single grid step.
    batch = 2
    observation = jax.random.normal(kx, (batch, obs_dim), jnp.float32)
    logits = jax.block_until_ready(fwd(observation, params))
    assert logits.shape == (batch, act_dim)
    ref = _reference_mlp(observation, params)
    assert jnp.allclose(logits, ref, atol=1e-2, rtol=1e-2), (logits, ref)

    # Larger batch: exercises the batch grid + padding (and the 2-TC split on
    # v7x, where the tile is capped so both TensorCores get work).
    key, kx2 = jax.random.split(key)
    batch2 = 384
    observation2 = jax.random.normal(kx2, (batch2, obs_dim), jnp.float32)
    logits2 = jax.block_until_ready(fwd(observation2, params))
    assert logits2.shape == (batch2, act_dim)
    ref2 = _reference_mlp(observation2, params)
    assert jnp.allclose(logits2, ref2, atol=1e-2, rtol=1e-2)

    print("KERNEL_OK")
</pallas_src>

<mosaic_0001>
module attributes {stable_mosaic.version = 11 : i64} {
  func.func @kernel(%arg0: i32, %arg1: memref<8x16xf32, #tpu.memory_space<vmem>>, %arg2: memref<16x32xf32, #tpu.memory_space<vmem>>, %arg3: memref<1x32xf32, #tpu.memory_space<vmem>>, %arg4: memref<32x32xf32, #tpu.memory_space<vmem>>, %arg5: memref<1x32xf32, #tpu.memory_space<vmem>>, %arg6: memref<32x8xf32, #tpu.memory_space<vmem>>, %arg7: memref<1x8xf32, #tpu.memory_space<vmem>>, %arg8: memref<8x8xf32, #tpu.memory_space<vmem>>) attributes {dimension_semantics = [#tpu.dimension_semantics<parallel>], iteration_bounds = array<i64: 1>, scalar_prefetch = 0 : i64, scratch_operands = 0 : i64, tpu.core_type = #tpu.core_type<tc>, window_params = [{transform_indices = @transform_0, window_bounds = array<i64: 8, 16>}, {pipeline_mode = #tpu.pipeline_mode<synchronous>, transform_indices = @transform_1, window_bounds = array<i64: 16, 32>}, {pipeline_mode = #tpu.pipeline_mode<synchronous>, transform_indices = @transform_2, window_bounds = array<i64: 1, 32>}, {pipeline_mode = #tpu.pipeline_mode<synchronous>, transform_indices = @transform_3, window_bounds = array<i64: 32, 32>}, {pipeline_mode = #tpu.pipeline_mode<synchronous>, transform_indices = @transform_4, window_bounds = array<i64: 1, 32>}, {pipeline_mode = #tpu.pipeline_mode<synchronous>, transform_indices = @transform_5, window_bounds = array<i64: 32, 8>}, {pipeline_mode = #tpu.pipeline_mode<synchronous>, transform_indices = @transform_6, window_bounds = array<i64: 1, 8>}, {transform_indices = @transform_7, window_bounds = array<i64: 8, 8>}]} {
    %c0 = arith.constant 0 : index
    %c0_0 = arith.constant 0 : index
    %0 = vector.load %arg1[%c0, %c0_0] : memref<8x16xf32, #tpu.memory_space<vmem>>, vector<8x16xf32>
    %c0_1 = arith.constant 0 : index
    %c0_2 = arith.constant 0 : index
    %1 = vector.load %arg2[%c0_1, %c0_2] : memref<16x32xf32, #tpu.memory_space<vmem>>, vector<16x32xf32>
    %c0_3 = arith.constant 0 : index
    %c0_4 = arith.constant 0 : index
    %2 = vector.load %arg3[%c0_3, %c0_4] : memref<1x32xf32, #tpu.memory_space<vmem>>, vector<1x32xf32>
    %cst = arith.constant dense<0.000000e+00> : vector<8x32xf32>
    %3 = tpu.matmul %0, %1, %cst {dimension_numbers = #tpu.dot_dimension_numbers<[1], [0], [0], [1], [0, 0, 1, 1], [], []>} : vector<8x16xf32>, vector<16x32xf32>, vector<8x32xf32> -> vector<8x32xf32>
    %4 = vector.broadcast %2 : vector<1x32xf32> to vector<8x32xf32>
    %5 = arith.addf %3, %4 : vector<8x32xf32>
    %cst_5 = arith.constant 0.000000e+00 : f32
    %6 = vector.broadcast %cst_5 : f32 to vector<8x32xf32>
    %7 = arith.maximumf %5, %6 : vector<8x32xf32>
    %c0_6 = arith.constant 0 : index
    %c0_7 = arith.constant 0 : index
    %8 = vector.load %arg4[%c0_6, %c0_7] : memref<32x32xf32, #tpu.memory_space<vmem>>, vector<32x32xf32>
    %c0_8 = arith.constant 0 : index
    %c0_9 = arith.constant 0 : index
    %9 = vector.load %arg5[%c0_8, %c0_9] : memref<1x32xf32, #tpu.memory_space<vmem>>, vector<1x32xf32>
    %cst_10 = arith.constant dense<0.000000e+00> : vector<8x32xf32>
    %10 = tpu.matmul %7, %8, %cst_10 {dimension_numbers = #tpu.dot_dimension_numbers<[1], [0], [0], [1], [0, 0, 1, 1], [], []>} : vector<8x32xf32>, vector<32x32xf32>, vector<8x32xf32> -> vector<8x32xf32>
    %11 = vector.broadcast %9 : vector<1x32xf32> to vector<8x32xf32>
    %12 = arith.addf %10, %11 : vector<8x32xf32>
    %cst_11 = arith.constant 0.000000e+00 : f32
    %13 = vector.broadcast %cst_11 : f32 to vector<8x32xf32>
    %14 = arith.maximumf %12, %13 : vector<8x32xf32>
    %c0_12 = arith.constant 0 : index
    %c0_13 = arith.constant 0 : index
    %15 = vector.load %arg6[%c0_12, %c0_13] : memref<32x8xf32, #tpu.memory_space<vmem>>, vector<32x8xf32>
    %c0_14 = arith.constant 0 : index
    %c0_15 = arith.constant 0 : index
    %16 = vector.load %arg7[%c0_14, %c0_15] : memref<1x8xf32, #tpu.memory_space<vmem>>, vector<1x8xf32>
    %cst_16 = arith.constant dense<0.000000e+00> : vector<8x8xf32>
    %17 = tpu.matmul %14, %15, %cst_16 {dimension_numbers = #tpu.dot_dimension_numbers<[1], [0], [0], [1], [0, 0, 1, 1], [], []>} : vector<8x32xf32>, vector<32x8xf32>, vector<8x8xf32> -> vector<8x8xf32>
    %18 = vector.broadcast %16 : vector<1x8xf32> to vector<8x8xf32>
    %19 = arith.addf %17, %18 : vector<8x8xf32>
    %c0_17 = arith.constant 0 : index
    %c0_18 = arith.constant 0 : index
    %20 = vector.load %arg8[%c0_17, %c0_18] : memref<8x8xf32, #tpu.memory_space<vmem>>, vector<8x8xf32>
    tpu.vector_store %arg8[%c0_17, %c0_18], %19 {strides = array<i32>} : memref<8x8xf32, #tpu.memory_space<vmem>>, vector<8x8xf32>,
    return
  }
  func.func @transform_0(%arg0: i32) -> (i32, i32) {
    %c0_i32 = arith.constant 0 : i32
    %c0_i32_0 = arith.constant 0 : i32
    return %arg0, %c0_i32 : i32, i32
  }
  func.func @transform_1(%arg0: i32) -> (i32, i32) {
    %c0_i32 = arith.constant 0 : i32
    %c0_i32_0 = arith.constant 0 : i32
    %c0_i32_1 = arith.constant 0 : i32
    return %c0_i32, %c0_i32_0 : i32, i32
  }
  func.func @transform_2(%arg0: i32) -> (i32, i32) {
    %c0_i32 = arith.constant 0 : i32
    %c0_i32_0 = arith.constant 0 : i32
    %c0_i32_1 = arith.constant 0 : i32
    return %c0_i32, %c0_i32_0 : i32, i32
  }
  func.func @transform_3(%arg0: i32) -> (i32, i32) {
    %c0_i32 = arith.constant 0 : i32
    %c0_i32_0 = arith.constant 0 : i32
    %c0_i32_1 = arith.constant 0 : i32
    return %c0_i32, %c0_i32_0 : i32, i32
  }
  func.func @transform_4(%arg0: i32) -> (i32, i32) {
    %c0_i32 = arith.constant 0 : i32
    %c0_i32_0 = arith.constant 0 : i32
    %c0_i32_1 = arith.constant 0 : i32
    return %c0_i32, %c0_i32_0 : i32, i32
  }
  func.func @transform_5(%arg0: i32) -> (i32, i32) {
    %c0_i32 = arith.constant 0 : i32
    %c0_i32_0 = arith.constant 0 : i32
    %c0_i32_1 = arith.constant 0 : i32
    return %c0_i32, %c0_i32_0 : i32, i32
  }
  func.func @transform_6(%arg0: i32) -> (i32, i32) {
    %c0_i32 = arith.constant 0 : i32
    %c0_i32_0 = arith.constant 0 : i32
    %c0_i32_1 = arith.constant 0 : i32
    return %c0_i32, %c0_i32_0 : i32, i32
  }
  func.func @transform_7(%arg0: i32) -> (i32, i32) {
    %c0_i32 = arith.constant 0 : i32
    %c0_i32_0 = arith.constant 0 : i32
    return %arg0, %c0_i32 : i32, i32
  }
}

</mosaic_0001>

<bundles_post_ra>
// kernel: dqn_forward.1
= control target key start
LH: loop header
LB: loop body
LE: loop exit
PB: predicated region body
PF: predicated region fallthrough
CT: control target
= control target key end

     0   :  { %v337_v0 = vmov 0.0   ;;  %vm338_vm0 = vmmov 0   ;;  %vm36_vm1 = vcmask 130048   ;;  %vm122_vm2 = vcmask 261120   ;;  %s426_s1 = inlined_call_operand.vmem [shape: f32[16,32], index: 1, kind: input, shape index: {}]   ;;  %s427_s0 = inlined_call_operand.vmem [shape: f32[8,16], index: 0, kind: input, shape index: {}]   ;;  %s428_s3 = inlined_call_operand.vmem [shape: f32[32,32], index: 3, kind: input, shape index: {}]   ;;  %s429_s5 = inlined_call_operand.vmem [shape: f32[32,8], index: 5, kind: input, shape index: {}]   ;;  %s430_s2 = inlined_call_operand.vmem [shape: f32[1,32], index: 2, kind: input, shape index: {}]   ;;  %s431_s4 = inlined_call_operand.vmem [shape: f32[1,32], index: 4, kind: input, shape index: {}]   ;;  %s432_s6 = inlined_call_operand.vmem [shape: f32[1,8], index: 6, kind: input, shape index: {}]   ;;  %s433_s7 = inlined_call_operand.vmem [shape: f32[8,8], index: 7, kind: output, shape index: {}]  }
   0x1   :  { %306 = vmatprep.subr.mxu0 %v337_v0  ;;  %v28_v1 = vld [vmem:[%s426_s1 + $0x8] sm:$0xff]  ;;  %v27_v2 = vld [vmem:[%s426_s1] sm:$0xff]  ;;  %310 = vmatprep.mubr.msk.f32.mxu0 %vm338_vm0, %v337_v0  ;;  %v114_v4 = vld [vmem:[%s428_s3 + $0x18] sm:$0xff]  ;;  %vm281_vm3 = vcmask 64512  }
   0x2   :  { %307 = vmatpush3.msra.mxu0 %v28_v1  ;;  %v26_v3 = vld [vmem:[%s427_s0] sm:$0xff]  ;;  %313 = vmatprep.subr.mxu1 %v337_v0  ;;  %v113_v5 = vld [vmem:[%s428_s3 + $0x10] sm:$0xff]  ;;  %v112_v6 = vld [vmem:[%s428_s3 + $0x8] sm:$0xff] }
   0x3   :  { %308 = vmatprep.subr.mxu0 %v337_v0  ;;  %314 = vmatpush3.msra.mxu1 %v114_v4  ;;  %v111_v7 = vld [vmem:[%s428_s3] sm:$0xff]  ;;  %v200_v8 = vld [vmem:[%s429_s5 + $0x18] sm:$0xff]  ;;  %v199_v14 = vld [vmem:[%s429_s5 + $0x10] sm:$0xff] }
   0x4   :  { %309 = vmatpush3.msra.mxu0 %v27_v2  ;;  %315 = vmatprep.subr.mxu1 %v337_v0  ;;  %v287_v9 = vld [vmem:[%s430_s2] ss:$0 sm:$0xff]  ;;  %v198_v15 = vld [vmem:[%s429_s5 + $0x8] sm:$0xff] }
   0x5   :  { %311 = vmatmul.mubr.msk.f32.vlgmr.msra.gmra.mxu0 %vm36_vm1, %v26_v3  ;;  %321 = vmatprep.mubr.msk.f32.mxu1 %vm338_vm0, %v337_v0  ;;  %v197_v16 = vld [vmem:[%s429_s5] sm:$0xff] }
   0x6   :  { %324 = vmatprep.subr.mxu0 %v337_v0  ;;  %332 = vmatprep.mubr.msk.f32.mxu0 %vm338_vm0, %v337_v0  ;;  %v289_v17 = vld [vmem:[%s431_s4] ss:$0 sm:$0xff] }
   0x7   :  { %316 = vmatpush3.msra.mxu1 %v113_v5  ;;  %325 = vmatpush3.msra.mxu0 %v200_v8  ;;  %v291_v22 = vld [vmem:[%s432_s6] ss:$0 sm:$0xff] }
   0x8   :  { %317 = vmatprep.subr.mxu1 %v337_v0  ;;  %326 = vmatprep.subr.mxu0 %v337_v0 }
   0x9   :  { %318 = vmatpush3.msra.mxu1 %v112_v6  ;;  %327 = vmatpush3.msra.mxu0 %v199_v14 }
   0xa   :  { %319 = vmatprep.subr.mxu1 %v337_v0  ;;  %328 = vmatprep.subr.mxu0 %v337_v0 }
   0xb   :  { %320 = vmatpush3.msra.mxu1 %v111_v7  ;;  %329 = vmatpush3.msra.mxu0 %v198_v15 }
   0xc   :  { %330 = vmatprep.subr.mxu0 %v337_v0 }
   0xd   :  { %331 = vmatpush3.msra.mxu0 %v197_v16 }
  0xc5   :  { %v106_v10 = vpop.f32.mrf.mxu0 }
  0xc6   :  { %v107_v11 = vadd.f32 %v287_v9, %v106_v10 }
  0xc7   :  { %v312_v12 = vpop.f32.mrf.mxu0 }
  0xc8   :  { %v110_v13 = vmax.f32 %v107_v11, 0.0 }
  0xca   :  { %322 = vmatmul.mubr.msk.f32.vlgmr.msra.gmra.mxu1 %vm122_vm2, %v110_v13 }
 0x18a   :  { %v192_v18 = vpop.f32.mrf.mxu1 }
 0x18b   :  { %v193_v19 = vadd.f32 %v289_v17, %v192_v18 }
 0x18c   :  { %v323_v20 = vpop.f32.mrf.mxu1 }
 0x18d   :  { %v196_v21 = vmax.f32 %v193_v19, 0.0 }
 0x18f   :  { %333 = vmatmul.mubr.msk.f32.vlgmr.msra.gmra.mxu0 %vm122_vm2, %v196_v21 }
 0x24f   :  { %v277_v23 = vpop.f32.mrf.mxu0 }
 0x250   :  { %v278_v24 = vadd.f32 %v291_v22, %v277_v23 }
 0x251   :  { %v334_v25 = vpop.f32.mrf.mxu0 }
 0x252   :  { %282 = vst.msk [vmem:[%s433_s7] sm:$0xff] %vm281_vm3, %v278_v24 }

</bundles_post_ra>
